<compile_context>
chip_gen: v6e
topology: v6e:2x2x1
jax: 0.10.0
libtpu: 0.0.40
codegen_flags: <defaults>
</compile_context>

<pallas_src>
import functools

import jax
import jax.numpy as jnp
from jax.experimental import pallas as pl
from jax.experimental.pallas import tpu as pltpu

num_cf = 2


def _make_conv_kernel(K, Cin, Cout, Wp, Mw, stride):
    """Implicit-GEMM conv kernel: one padded image per grid step."""

    def kernel(x_ref, w_ref, o_ref):
        # x_ref: (1, Cin, Lflat)   bf16   flattened, zero-padded image
        # w_ref: (K*K, Cout, Cin)  bf16   per-tap weight matrices
        # o_ref: (1, Cout, Mw)     f32    "wide" output (junk columns stripped later)
        xw = x_ref[0]                                    # (Cin, Lflat)
        acc = jnp.zeros((Cout, Mw), dtype=jnp.float32)
        for kh in range(K):                              # static K*K unroll
            for kw in range(K):
                off = kh * Wp + kw
                if stride == 1:
                    xs = xw[:, off:off + Mw]             # (Cin, Mw), static slice
                else:
                    xs = jax.lax.slice(
                        xw, (0, off),
                        (Cin, off + (Mw - 1) * stride + 1),
                        (1, stride))
                acc = acc + jnp.dot(w_ref[kh * K + kw], xs,
                                    preferred_element_type=jnp.float32)
        o_ref[0] = acc

    return kernel


def _combine_templates(coefficients, templates):
    """mean_i(sum_t coef_i[t] * templates[t]) -> (Cout, Cin, K, K) in f32.

    Linear-equivalent to the PyTorch combine-then-mean.  Tiny; left to XLA
    (perf review: drop the dedicated 1-row matmul kernel launch).
    """
    T = templates.shape[0]
    coef_mean = jnp.mean(
        coefficients.reshape(coefficients.shape[0], T).astype(jnp.float32), axis=0)
    return jnp.einsum("t,toihw->oihw", coef_mean, templates.astype(jnp.float32))


@functools.partial(jax.jit, static_argnames=("stride", "padding"))
def sconv2d_forward(x, templates, coefficients, stride=1, padding=1):
    """SConv2d.forward.  x: NCHW float32.  Returns NCHW float32."""
    T, Cout, Cin, K, _ = templates.shape
    N, _, H, W = x.shape
    OH = (H + 2 * padding - K) // stride + 1
    OW = (W + 2 * padding - K) // stride + 1
    Hp, Wp = H + 2 * padding, W + 2 * padding
    Mw = OH * Wp                      # wide output columns (includes junk cols)

    # ---- template-bank combine (plain jnp), then bf16 per-tap weight matrices.
    w_oihw = _combine_templates(coefficients, templates)
    w_taps = (w_oihw.transpose(2, 3, 0, 1)               # (K, K, Cout, Cin)
              .reshape(K * K, Cout, Cin)
              .astype(jnp.bfloat16))

    # ---- pad spatially, flatten (H, W) into one lane axis, pad so every tap
    #      window stays in bounds, round the lane axis up to a 128 multiple.
    xp = jnp.pad(x.astype(jnp.bfloat16),
                 ((0, 0), (0, 0), (padding, padding), (padding, padding)))
    need = (K - 1) * Wp + (K - 1) + stride * (Mw - 1) + 1
    Lflat = ((max(Hp * Wp, need) + 127) // 128) * 128
    xflat = jnp.pad(xp.reshape(N, Cin, Hp * Wp),
                    ((0, 0), (0, 0), (0, Lflat - Hp * Wp)))

    # TODO(synk): for large images, tile OH (halo'd input blocks) and Cout so
    # per-step VMEM stays bounded on v7x's 64 MiB; at these shapes a full image
    # per grid step is already the biggest (and lane-dense) tile.
    kernel = _make_conv_kernel(K, Cin, Cout, Wp, Mw, stride)
    out_wide = pl.pallas_call(
        kernel,
        grid=(N,),
        in_specs=[
            pl.BlockSpec((1, Cin, Lflat), lambda n: (n, 0, 0)),
            # Constant block index -> stays resident across grid steps.
            # TODO(synk): pipeline_mode=pl.Buffered(1) would single-buffer this
            # tiny weight block (v7x VMEM headroom); default kept for portability.
            pl.BlockSpec((K * K, Cout, Cin), lambda n: (0, 0, 0)),
        ],
        out_specs=pl.BlockSpec((1, Cout, Mw), lambda n: (n, 0, 0)),
        out_shape=jax.ShapeDtypeStruct((N, Cout, Mw), jnp.float32),
        compiler_params=pltpu.CompilerParams(
            dimension_semantics=("parallel",)),
    )(xflat, w_taps)

    # Strip the junk columns (ow in [OW, Wp)).  Output is already in
    # (N, Cout, ...) order, so no NCHW transpose is needed.
    out = out_wide.reshape(N, Cout, OH, Wp)[:, :, :, :OW]
    return out


if __name__ == "__main__":
    key = jax.random.PRNGKey(0)
    k_x, k_t, k_c = jax.random.split(key, 3)

    # Bank / module configuration implied by SConv2d.__init__:
    #   bank.coefficient_shape = (num_templates, 1, 1, 1, 1)
    #   bank templates         = (num_templates, Cout, Cin, K, K)
    num_templates, Cout, Cin, K = 4, 8, 4, 3
    stride, padding = 1, 1
    N, H, W = 2, 16, 16

    x = jax.random.normal(k_x, (N, Cin, H, W), dtype=jnp.float32)
    templates = 0.1 * jax.random.normal(
        k_t, (num_templates, Cout, Cin, K, K), dtype=jnp.float32)
    # PyTorch initializes coefficients to zeros; use non-zero values here so the
    # output is non-trivial (semantics identical).
    coefficients = jax.random.normal(
        k_c, (num_cf, num_templates, 1, 1, 1, 1), dtype=jnp.float32)

    out = sconv2d_forward(x, templates, coefficients,
                          stride=stride, padding=padding)
    out = jax.block_until_ready(out)

    # Reference: exact module semantics in f32 via XLA's conv.  The kernel uses
    # bf16 MXU operands (per the perf review) with f32 accumulation, so compare
    # at bf16-level tolerance; layout/alignment bugs would show as O(1) errors.
    w_ref = _combine_templates(coefficients, templates)
    ref = jax.lax.conv_general_dilated(
        x, w_ref, window_strides=(stride, stride),
        padding=((padding, padding), (padding, padding)),
        dimension_numbers=("NCHW", "OIHW", "NCHW"))
    assert out.shape == ref.shape == (N, Cout, H, W)
    max_err = float(jnp.max(jnp.abs(out - ref)))
    assert max_err < 5e-2, f"mismatch vs reference: max_err={max_err}"

    print("KERNEL_OK")
</pallas_src>

<mosaic_0001>
module attributes {stable_mosaic.version = 11 : i64} {
  func.func @kernel(%arg0: i32, %arg1: memref<1x4x384xbf16, #tpu.memory_space<vmem>>, %arg2: memref<9x8x4xbf16, #tpu.memory_space<vmem>>, %arg3: memref<1x8x288xf32, #tpu.memory_space<vmem>>) attributes {dimension_semantics = [#tpu.dimension_semantics<parallel>], iteration_bounds = array<i64: 2>, scalar_prefetch = 0 : i64, scratch_operands = 0 : i64, tpu.core_type = #tpu.core_type<tc>, window_params = [{transform_indices = @transform_0, window_bounds = array<i64: 1, 4, 384>}, {pipeline_mode = #tpu.pipeline_mode<synchronous>, transform_indices = @transform_1, window_bounds = array<i64: 9, 8, 4>}, {transform_indices = @transform_2, window_bounds = array<i64: 1, 8, 288>}]} {
    %c0 = arith.constant 0 : index
    %c0_0 = arith.constant 0 : index
    %c0_1 = arith.constant 0 : index
    %0 = vector.load %arg1[%c0, %c0_0, %c0_1] : memref<1x4x384xbf16, #tpu.memory_space<vmem>>, vector<1x4x384xbf16>
    %1 = vector.shape_cast %0 : vector<1x4x384xbf16> to vector<4x384xbf16>
    %cst = arith.constant 0.000000e+00 : f32
    %2 = vector.broadcast %cst : f32 to vector<8x288xf32>
    %3 = vector.extract_strided_slice %1 {offsets = [0, 0], sizes = [4, 288], strides = [1, 1]} : vector<4x384xbf16> to vector<4x288xbf16>
    %c0_2 = arith.constant 0 : index
    %c0_3 = arith.constant 0 : index
    %c0_4 = arith.constant 0 : index
    %4 = vector.load %arg2[%c0_2, %c0_3, %c0_4] : memref<9x8x4xbf16, #tpu.memory_space<vmem>>, vector<1x8x4xbf16>
    %5 = vector.shape_cast %4 : vector<1x8x4xbf16> to vector<8x4xbf16>
    %cst_5 = arith.constant dense<0.000000e+00> : vector<8x288xf32>
    %6 = tpu.matmul %5, %3, %cst_5 {dimension_numbers = #tpu.dot_dimension_numbers<[1], [0], [0], [1], [0, 0, 1, 1], [], []>} : vector<8x4xbf16>, vector<4x288xbf16>, vector<8x288xf32> -> vector<8x288xf32>
    %7 = arith.addf %2, %6 : vector<8x288xf32>
    %8 = vector.extract_strided_slice %1 {offsets = [0, 1], sizes = [4, 288], strides = [1, 1]} : vector<4x384xbf16> to vector<4x288xbf16>
    %c1 = arith.constant 1 : index
    %c0_6 = arith.constant 0 : index
    %c0_7 = arith.constant 0 : index
    %9 = vector.load %arg2[%c1, %c0_6, %c0_7] : memref<9x8x4xbf16, #tpu.memory_space<vmem>>, vector<1x8x4xbf16>
    %10 = vector.shape_cast %9 : vector<1x8x4xbf16> to vector<8x4xbf16>
    %cst_8 = arith.constant dense<0.000000e+00> : vector<8x288xf32>
    %11 = tpu.matmul %10, %8, %cst_8 {dimension_numbers = #tpu.dot_dimension_numbers<[1], [0], [0], [1], [0, 0, 1, 1], [], []>} : vector<8x4xbf16>, vector<4x288xbf16>, vector<8x288xf32> -> vector<8x288xf32>
    %12 = arith.addf %7, %11 : vector<8x288xf32>
    %13 = vector.extract_strided_slice %1 {offsets = [0, 2], sizes = [4, 288], strides = [1, 1]} : vector<4x384xbf16> to vector<4x288xbf16>
    %c2 = arith.constant 2 : index
    %c0_9 = arith.constant 0 : index
    %c0_10 = arith.constant 0 : index
    %14 = vector.load %arg2[%c2, %c0_9, %c0_10] : memref<9x8x4xbf16, #tpu.memory_space<vmem>>, vector<1x8x4xbf16>
    %15 = vector.shape_cast %14 : vector<1x8x4xbf16> to vector<8x4xbf16>
    %cst_11 = arith.constant dense<0.000000e+00> : vector<8x288xf32>
    %16 = tpu.matmul %15, %13, %cst_11 {dimension_numbers = #tpu.dot_dimension_numbers<[1], [0], [0], [1], [0, 0, 1, 1], [], []>} : vector<8x4xbf16>, vector<4x288xbf16>, vector<8x288xf32> -> vector<8x288xf32>
    %17 = arith.addf %12, %16 : vector<8x288xf32>
    %18 = vector.extract_strided_slice %1 {offsets = [0, 18], sizes = [4, 288], strides = [1, 1]} : vector<4x384xbf16> to vector<4x288xbf16>
    %c3 = arith.constant 3 : index
    %c0_12 = arith.constant 0 : index
    %c0_13 = arith.constant 0 : index
    %19 = vector.load %arg2[%c3, %c0_12, %c0_13] : memref<9x8x4xbf16, #tpu.memory_space<vmem>>, vector<1x8x4xbf16>
    %20 = vector.shape_cast %19 : vector<1x8x4xbf16> to vector<8x4xbf16>
    %cst_14 = arith.constant dense<0.000000e+00> : vector<8x288xf32>
    %21 = tpu.matmul %20, %18, %cst_14 {dimension_numbers = #tpu.dot_dimension_numbers<[1], [0], [0], [1], [0, 0, 1, 1], [], []>} : vector<8x4xbf16>, vector<4x288xbf16>, vector<8x288xf32> -> vector<8x288xf32>
    %22 = arith.addf %17, %21 : vector<8x288xf32>
    %23 = vector.extract_strided_slice %1 {offsets = [0, 19], sizes = [4, 288], strides = [1, 1]} : vector<4x384xbf16> to vector<4x288xbf16>
    %c4 = arith.constant 4 : index
    %c0_15 = arith.constant 0 : index
    %c0_16 = arith.constant 0 : index
    %24 = vector.load %arg2[%c4, %c0_15, %c0_16] : memref<9x8x4xbf16, #tpu.memory_space<vmem>>, vector<1x8x4xbf16>
    %25 = vector.shape_cast %24 : vector<1x8x4xbf16> to vector<8x4xbf16>
    %cst_17 = arith.constant dense<0.000000e+00> : vector<8x288xf32>
    %26 = tpu.matmul %25, %23, %cst_17 {dimension_numbers = #tpu.dot_dimension_numbers<[1], [0], [0], [1], [0, 0, 1, 1], [], []>} : vector<8x4xbf16>, vector<4x288xbf16>, vector<8x288xf32> -> vector<8x288xf32>
    %27 = arith.addf %22, %26 : vector<8x288xf32>
    %28 = vector.extract_strided_slice %1 {offsets = [0, 20], sizes = [4, 288], strides = [1, 1]} : vector<4x384xbf16> to vector<4x288xbf16>
    %c5 = arith.constant 5 : index
    %c0_18 = arith.constant 0 : index
    %c0_19 = arith.constant 0 : index
    %29 = vector.load %arg2[%c5, %c0_18, %c0_19] : memref<9x8x4xbf16, #tpu.memory_space<vmem>>, vector<1x8x4xbf16>
    %30 = vector.shape_cast %29 : vector<1x8x4xbf16> to vector<8x4xbf16>
    %cst_20 = arith.constant dense<0.000000e+00> : vector<8x288xf32>
    %31 = tpu.matmul %30, %28, %cst_20 {dimension_numbers = #tpu.dot_dimension_numbers<[1], [0], [0], [1], [0, 0, 1, 1], [], []>} : vector<8x4xbf16>, vector<4x288xbf16>, vector<8x288xf32> -> vector<8x288xf32>
    %32 = arith.addf %27, %31 : vector<8x288xf32>
    %33 = vector.extract_strided_slice %1 {offsets = [0, 36], sizes = [4, 288], strides = [1, 1]} : vector<4x384xbf16> to vector<4x288xbf16>
    %c6 = arith.constant 6 : index
    %c0_21 = arith.constant 0 : index
    %c0_22 = arith.constant 0 : index
    %34 = vector.load %arg2[%c6, %c0_21, %c0_22] : memref<9x8x4xbf16, #tpu.memory_space<vmem>>, vector<1x8x4xbf16>
    %35 = vector.shape_cast %34 : vector<1x8x4xbf16> to vector<8x4xbf16>
    %cst_23 = arith.constant dense<0.000000e+00> : vector<8x288xf32>
    %36 = tpu.matmul %35, %33, %cst_23 {dimension_numbers = #tpu.dot_dimension_numbers<[1], [0], [0], [1], [0, 0, 1, 1], [], []>} : vector<8x4xbf16>, vector<4x288xbf16>, vector<8x288xf32> -> vector<8x288xf32>
    %37 = arith.addf %32, %36 : vector<8x288xf32>
    %38 = vector.extract_strided_slice %1 {offsets = [0, 37], sizes = [4, 288], strides = [1, 1]} : vector<4x384xbf16> to vector<4x288xbf16>
    %c7 = arith.constant 7 : index
    %c0_24 = arith.constant 0 : index
    %c0_25 = arith.constant 0 : index
    %39 = vector.load %arg2[%c7, %c0_24, %c0_25] : memref<9x8x4xbf16, #tpu.memory_space<vmem>>, vector<1x8x4xbf16>
    %40 = vector.shape_cast %39 : vector<1x8x4xbf16> to vector<8x4xbf16>
    %cst_26 = arith.constant dense<0.000000e+00> : vector<8x288xf32>
    %41 = tpu.matmul %40, %38, %cst_26 {dimension_numbers = #tpu.dot_dimension_numbers<[1], [0], [0], [1], [0, 0, 1, 1], [], []>} : vector<8x4xbf16>, vector<4x288xbf16>, vector<8x288xf32> -> vector<8x288xf32>
    %42 = arith.addf %37, %41 : vector<8x288xf32>
    %43 = vector.extract_strided_slice %1 {offsets = [0, 38], sizes = [4, 288], strides = [1, 1]} : vector<4x384xbf16> to vector<4x288xbf16>
    %c8 = arith.constant 8 : index
    %c0_27 = arith.constant 0 : index
    %c0_28 = arith.constant 0 : index
    %44 = vector.load %arg2[%c8, %c0_27, %c0_28] : memref<9x8x4xbf16, #tpu.memory_space<vmem>>, vector<1x8x4xbf16>
    %45 = vector.shape_cast %44 : vector<1x8x4xbf16> to vector<8x4xbf16>
    %cst_29 = arith.constant dense<0.000000e+00> : vector<8x288xf32>
    %46 = tpu.matmul %45, %43, %cst_29 {dimension_numbers = #tpu.dot_dimension_numbers<[1], [0], [0], [1], [0, 0, 1, 1], [], []>} : vector<8x4xbf16>, vector<4x288xbf16>, vector<8x288xf32> -> vector<8x288xf32>
    %47 = arith.addf %42, %46 : vector<8x288xf32>
    %c0_30 = arith.constant 0 : index
    %c0_31 = arith.constant 0 : index
    %c0_32 = arith.constant 0 : index
    %48 = vector.load %arg3[%c0_30, %c0_31, %c0_32] : memref<1x8x288xf32, #tpu.memory_space<vmem>>, vector<1x8x288xf32>
    %49 = vector.shape_cast %48 : vector<1x8x288xf32> to vector<8x288xf32>
    %50 = vector.shape_cast %47 : vector<8x288xf32> to vector<1x8x288xf32>
    tpu.vector_store %arg3[%c0_30, %c0_31, %c0_32], %50 {strides = array<i32>} : memref<1x8x288xf32, #tpu.memory_space<vmem>>, vector<1x8x288xf32>,
    return
  }
  func.func @transform_0(%arg0: i32) -> (i32, i32, i32) {
    %c0_i32 = arith.constant 0 : i32
    %c0_i32_0 = arith.constant 0 : i32
    %c0_i32_1 = arith.constant 0 : i32
    return %arg0, %c0_i32, %c0_i32_0 : i32, i32, i32
  }
  func.func @transform_1(%arg0: i32) -> (i32, i32, i32) {
    %c0_i32 = arith.constant 0 : i32
    %c0_i32_0 = arith.constant 0 : i32
    %c0_i32_1 = arith.constant 0 : i32
    %c0_i32_2 = arith.constant 0 : i32
    return %c0_i32, %c0_i32_0, %c0_i32_1 : i32, i32, i32
  }
  func.func @transform_2(%arg0: i32) -> (i32, i32, i32) {
    %c0_i32 = arith.constant 0 : i32
    %c0_i32_0 = arith.constant 0 : i32
    %c0_i32_1 = arith.constant 0 : i32
    return %arg0, %c0_i32, %c0_i32_0 : i32, i32, i32
  }
}

</mosaic_0001>

<bundles_post_ra>
// kernel: sconv2d_forward.1
= control target key start
LH: loop header
LB: loop body
LE: loop exit
PB: predicated region body
PF: predicated region fallthrough
CT: control target
= control target key end

     0   :  { %s1345_s9 = smov 0   ;;  %s1476_s0 = inlined_call_operand.vmem [shape: bf16[2,4,384], index: 0, kind: input, shape index: {}]   ;;  %s1477_s1 = inlined_call_operand.vmem [shape: bf16[9,8,4], index: 1, kind: input, shape index: {}]   ;;  %s1478_s2 = inlined_call_operand.vmem [shape: f32[2,8,288], index: 2, kind: output, shape index: {}]  }
   0x1 LB: > { %s1171_s10 = sadd.s32 4294967295, %s1316_s9   ;;  %p1175_p0 = scmp.ge.s32.totalorder %s1316_s9, 1  ;;  %s1316_s9 = sphi %s1345_s9, %s12_s9  }
   0x2   : > { %p112_p1 = scmp.lt.s32.totalorder %s1316_s9, 3 }
   0x4   : > { %p113_p2 = pnand %p1175_p0, %p112_p1 }
   0x5   : > { %p134_p3 = scmp.lt.s32.totalorder (!%p113_p2), %s1171_s10, 1  ;;  %s1322_s15 = smov (!%p113_p2), 127  }
   0x6   : > { %116 = sbr.rel (%p113_p2) target bundleno = 407 (0x197), region = 28  ;;  %s1323_s16 = smov (!%p113_p2), 126  }
   0x7   : > { %s1324_s17 = smov (!%p113_p2), 110   ;;  %s1325_s18 = smov (!%p113_p2), 109  }
   0x8   : > { %s1326_s19 = smov (!%p113_p2), 108   ;;  %s1327_s20 = smov (!%p113_p2), 92  }
   0x9   : > { %s1328_s21 = smov (!%p113_p2), 91   ;;  %s1329_s22 = smov (!%p113_p2), 90  }
   0xb   : > { %v154_v0 = vlaneseq  ;;  %v1318_v1 = vmov 1983009808   ;;  %v1319_v3 = vmov 0.0   ;;  %s1480_s10 = smov (!%p134_p3, %s1171_s10), 1  ;;  %vm1320_vm0 = vmmov 0  }
   0xc   : > { %v152_v2 = vunpack.c.l.s4 %v1318_v1  ;;  %1233 = vmatprep.subr.bf16.mxu1 %v1319_v3  ;;  %1235 = vmatprep.mubr.msk.bf16.mxu1 %vm1320_vm0, %v1319_v3  ;;  %s1287_s11 = smul.u32 6, %s1480_s10  ;;  %v1321_v6 = vmov 0   ;;  %vm179_vm1 = vcmask 1041408   ;;  %vm172_vm2 = vcmask 1039360   ;;  %v1178_v17 = vld [vmem:[%s1477_s1 + $0x4] sm:$0xf] }
   0xd   : > { %v155_v4 = vshrl.u32 %v154_v0, 7  ;;  %221 = vmatprep.mubr.bf16.mxu0 %v1321_v6  ;;  %vm175_vm3 = vcmask 31744   ;;  %vm371_vm4 = vcmask 1031168   ;;  %v146_v27 = vld [vmem:[%s1477_s1] sm:$0xf]  ;;  %vm478_vm5 = vcmask 900096  }
   0xe   : > { %v153_v5 = vunpack.c.0.s8 %v152_v2  ;;  %s138_s14 = scalar_lea.vmem %s1476_s0, %s1287_s11  ;;  %v1185_v36 = vld [vmem:[%s1477_s1 + $0x8] sm:$0xf]  ;;  %vm585_vm6 = vcmask 891904   ;;  %v1189_v45 = vld [vmem:[%s1477_s1 + $0xc] sm:$0xf]  ;;  %vm692_vm7 = vcmask 883712  }
   0xf   : > { %v145_v8 = vld [vmem:[%s138_s14] sm:$0x3f]  ;;  %v1193_v53 = vld [vmem:[%s1477_s1 + $0x10] sm:$0xf]  ;;  %vm799_vm8 = vcmask 752640   ;;  %vm906_vm9 = vcmask 744448  }
  0x10   : > { %v156_v7 = vsub.s32 %v153_v5, %v155_v4  ;;  %v150_v10 = vcombine.high %v145_v8, %v145_v8  ;;  %v1197_v61 = vld [vmem:[%s1477_s1 + $0x14] sm:$0xf]  ;;  %v1201_v5 = vld [vmem:[%s1477_s1 + $0x18] sm:$0xf]  ;;  %vm1013_vm10 = vcmask 736256   ;;  %vm1114_vm11 = vcmask 261120  }
  0x12   : > { %v157_v9 = vrot.slane %v145_v8, %v156_v7  ;;  %v164_v11 = vrot.slane %v150_v10, %v156_v7 }
  0x14   : > { %166 = vrot.lane.b32.xlu0 %v157_v9, %s1322_s15  ;;  %v165_v12 = vcombine.high %v157_v9, %v157_v9  ;;  %170 = vrot.lane.b32.xlu1 %v164_v11, %s1322_s15  ;;  %v280_v20 = vsel %vm179_vm1, %v164_v11, 0  ;;  %v274_v23 = vsel %vm179_vm1, %v157_v9, 0 }
  0x18   : > { %168 = vrot.lane.b32.xlu0 %v165_v12, %s1322_s15  ;;  %365 = vrot.lane.b32.xlu1 %v157_v9, %s1323_s16  ;;  %s1288_s15 = smul.u32 24, %s1480_s10 }
  0x1c   : > { %367 = vrot.lane.b32.xlu0 %v165_v12, %s1323_s16  ;;  %369 = vrot.lane.b32.xlu1 %v164_v11, %s1323_s16 }
  0x20   : > { %472 = vrot.lane.b32.xlu0 %v157_v9, %s1324_s17  ;;  %474 = vrot.lane.b32.xlu1 %v165_v12, %s1324_s17 }
  0x24   : > { %476 = vrot.lane.b32.xlu0 %v164_v11, %s1324_s17  ;;  %579 = vrot.lane.b32.xlu1 %v157_v9, %s1325_s18 }
  0x28   : > { %581 = vrot.lane.b32.xlu0 %v165_v12, %s1325_s18  ;;  %583 = vrot.lane.b32.xlu1 %v164_v11, %s1325_s18  ;;  %s143_s18 = scalar_lea.vmem %s1478_s2, %s1288_s15 }
  0x2c   : > { %686 = vrot.lane.b32.xlu0 %v157_v9, %s1326_s19  ;;  %688 = vrot.lane.b32.xlu1 %v165_v12, %s1326_s19 }
  0x30   : > { %690 = vrot.lane.b32.xlu0 %v164_v11, %s1326_s19  ;;  %793 = vrot.lane.b32.xlu1 %v157_v9, %s1327_s20 }
  0x34   : > { %795 = vrot.lane.b32.xlu0 %v165_v12, %s1327_s20  ;;  %797 = vrot.lane.b32.xlu1 %v164_v11, %s1327_s20 }
  0x38   : > { %900 = vrot.lane.b32.xlu0 %v157_v9, %s1328_s21  ;;  %902 = vrot.lane.b32.xlu1 %v165_v12, %s1328_s21 }
  0x3c   : > { %904 = vrot.lane.b32.xlu0 %v164_v11, %s1328_s21  ;;  %1007 = vrot.lane.b32.xlu1 %v157_v9, %s1329_s22 }
  0x40   : > { %1009 = vrot.lane.b32.xlu0 %v165_v12, %s1329_s22  ;;  %1011 = vrot.lane.b32.xlu1 %v164_v11, %s1329_s22 }
  0x86   : > { %v167_v13 = vpop.permute.xlu0 %166  ;;  %v171_v14 = vpop.permute.xlu1 %170 }
  0x87   : > { %v187_v15 = vsel %vm179_vm1, %v171_v14, 0 }
  0x88   : > { %1234 = vmatpush3.bf16.msra.mxu1 %v187_v15 }
  0x89   : > { %1239 = vmatprep.subr.bf16.mxu1 %v1319_v3 }
  0x8a   : > { %v169_v16 = vpop.permute.xlu0 %168  ;;  %v366_v22 = vpop.permute.xlu1 %365 }
  0x8b   : > { %v174_v18 = vsel %vm172_vm2, %v169_v16, %v171_v14  ;;  %v173_v19 = vsel %vm172_vm2, %v167_v13, %v169_v16  ;;  %1236 = vmatmul.mubr.msk.bf16.vlgmr.msra.gmra.mxu1 %vm175_vm3, %v1178_v17  ;;  %v1205_v13 = vld [vmem:[%s1477_s1 + $0x1c] sm:$0xf] }
  0x8c   : > { %1179 = vmatprep.subr.msk.bf16.mxu0 %vm179_vm1, %v174_v18  ;;  %v181_v21 = vsel %vm179_vm1, %v173_v19, 0  ;;  %1240 = vmatpush3.bf16.msra.mxu1 %v280_v20 }
  0x8d   : > { %204 = vmatpush1.bf16.msra.mxu0 %v181_v21  ;;  %1241 = vmatprep.mubr.msk.bf16.mxu1 %vm1320_vm0, %v1319_v3 }
  0x8e   : > { %1182 = vmatprep.subr.msk.bf16.mxu0 %vm179_vm1, %v165_v12  ;;  %v368_v24 = vpop.permute.xlu0 %367  ;;  %1245 = vmatprep.subr.bf16.mxu1 %v1319_v3  ;;  %v370_v25 = vpop.permute.xlu1 %369 }
  0x8f   : > { %v373_v26 = vsel %vm371_vm4, %v368_v24, %v370_v25  ;;  %v372_v29 = vsel %vm371_vm4, %v366_v22, %v368_v24  ;;  %v384_v30 = vsel %vm179_vm1, %v370_v25, 0 }
  0x90   : > { %1180 = vmatmul.mubr.msk.bf16.vlgmr.msra.gmra.mxu0 %vm175_vm3, %v1178_v17  ;;  %v378_v32 = vsel %vm179_vm1, %v372_v29, 0  ;;  %v1209_v17 = vld [vmem:[%s1477_s1 + $0x20] sm:$0xf] }
  0x91   : > { %297 = vmatpush1.bf16.msra.mxu0 %v274_v23  ;;  %314 = vmatprep.mubr.bf16.mxu0 %v1321_v6 }
  0x92   : > { %1186 = vmatprep.subr.msk.bf16.mxu0 %vm179_vm1, %v373_v26  ;;  %v473_v28 = vpop.permute.xlu0 %472  ;;  %v475_v31 = vpop.permute.xlu1 %474 }
  0x93   : > { %1242 = vmatmul.mubr.msk.bf16.vlgmr.msra.gmra.mxu1 %vm175_vm3, %v146_v27  ;;  %v479_v38 = vsel %vm478_vm5, %v473_v28, %v475_v31 }
  0x94   : > { %1246 = vmatpush3.bf16.msra.mxu1 %v384_v30  ;;  %1247 = vmatprep.mubr.msk.bf16.mxu1 %vm1320_vm0, %v1319_v3  ;;  %v485_v41 = vsel %vm179_vm1, %v479_v38, 0 }
  0x95   : > { %1251 = vmatprep.subr.bf16.mxu1 %v1319_v3 }
  0x96   : > { %v477_v33 = vpop.permute.xlu0 %476  ;;  %v580_v35 = vpop.permute.xlu1 %579 }
  0x97   : > { %v480_v34 = vsel %vm478_vm5, %v475_v31, %v477_v33  ;;  %v491_v39 = vsel %vm179_vm1, %v477_v33, 0 }
  0x98   : > { %1183 = vmatmul.mubr.msk.bf16.vlgmr.msra.gmra.mxu0 %vm175_vm3, %v146_v27 }
  0x99   : > { %401 = vmatpush1.bf16.msra.mxu0 %v378_v32  ;;  %418 = vmatprep.mubr.bf16.mxu0 %v1321_v6 }
  0x9a   : > { %1190 = vmatprep.subr.msk.bf16.mxu0 %vm179_vm1, %v480_v34  ;;  %v582_v37 = vpop.permute.xlu0 %581  ;;  %v584_v40 = vpop.permute.xlu1 %583 }
  0x9b   : > { %1248 = vmatmul.mubr.msk.bf16.vlgmr.msra.gmra.mxu1 %vm175_vm3, %v1185_v36  ;;  %v587_v43 = vsel %vm585_vm6, %v582_v37, %v584_v40  ;;  %v586_v46 = vsel %vm585_vm6, %v580_v35, %v582_v37  ;;  %v598_v47 = vsel %vm179_vm1, %v584_v40, 0 }
  0x9c   : > { %1252 = vmatpush3.bf16.msra.mxu1 %v491_v39  ;;  %1253 = vmatprep.mubr.msk.bf16.mxu1 %vm1320_vm0, %v1319_v3  ;;  %v592_v49 = vsel %vm179_vm1, %v586_v46, 0 }
  0x9d   : > { %1257 = vmatprep.subr.bf16.mxu1 %v1319_v3 }
  0x9e   : > { %v687_v42 = vpop.permute.xlu0 %686  ;;  %v689_v44 = vpop.permute.xlu1 %688 }
  0x9f   : > { %v693_v54 = vsel %vm692_vm7, %v687_v42, %v689_v44 }
  0xa0   : > { %1187 = vmatmul.mubr.msk.bf16.vlgmr.msra.gmra.mxu0 %vm175_vm3, %v1185_v36  ;;  %v699_v57 = vsel %vm179_vm1, %v693_v54, 0 }
  0xa1   : > { %508 = vmatpush1.bf16.msra.mxu0 %v485_v41  ;;  %525 = vmatprep.mubr.bf16.mxu0 %v1321_v6 }
  0xa2   : > { %1194 = vmatprep.subr.msk.bf16.mxu0 %vm179_vm1, %v587_v43  ;;  %v691_v48 = vpop.permute.xlu0 %690  ;;  %v794_v50 = vpop.permute.xlu1 %793 }
  0xa3   : > { %1254 = vmatmul.mubr.msk.bf16.vlgmr.msra.gmra.mxu1 %vm175_vm3, %v1189_v45  ;;  %v694_v51 = vsel %vm692_vm7, %v689_v44, %v691_v48  ;;  %v705_v55 = vsel %vm179_vm1, %v691_v48, 0 }
  0xa4   : > { %1258 = vmatpush3.bf16.msra.mxu1 %v598_v47  ;;  %1259 = vmatprep.mubr.msk.bf16.mxu1 %vm1320_vm0, %v1319_v3 }
  0xa5   : > { %1263 = vmatprep.subr.bf16.mxu1 %v1319_v3 }
  0xa6   : > { %v796_v52 = vpop.permute.xlu0 %795  ;;  %v798_v56 = vpop.permute.xlu1 %797 }
  0xa7   : > { %v801_v59 = vsel %vm799_vm8, %v796_v52, %v798_v56  ;;  %v800_v62 = vsel %vm799_vm8, %v794_v50, %v796_v52  ;;  %v812_v63 = vsel %vm179_vm1, %v798_v56, 0 }
  0xa8   : > { %1191 = vmatmul.mubr.msk.bf16.vlgmr.msra.gmra.mxu0 %vm175_vm3, %v1189_v45  ;;  %v806_v1 = vsel %vm179_vm1, %v800_v62, 0 }
  0xa9   : > { %615 = vmatpush1.bf16.msra.mxu0 %v592_v49  ;;  %632 = vmatprep.mubr.bf16.mxu0 %v1321_v6 }
  0xaa   : > { %1198 = vmatprep.subr.msk.bf16.mxu0 %vm179_vm1, %v694_v51  ;;  %v901_v58 = vpop.permute.xlu0 %900  ;;  %v903_v60 = vpop.permute.xlu1 %902 }
  0xab   : > { %1260 = vmatmul.mubr.msk.bf16.vlgmr.msra.gmra.mxu1 %vm175_vm3, %v1193_v53  ;;  %v907_v7 = vsel %vm906_vm9, %v901_v58, %v903_v60 }
  0xac   : > { %1264 = vmatpush3.bf16.msra.mxu1 %v705_v55  ;;  %1265 = vmatprep.mubr.msk.bf16.mxu1 %vm1320_vm0, %v1319_v3  ;;  %v913_v11 = vsel %vm179_vm1, %v907_v7, 0 }
  0xad   : > { %1269 = vmatprep.subr.bf16.mxu1 %v1319_v3 }
  0xae   : > { %v905_v0 = vpop.permute.xlu0 %904  ;;  %v1008_v2 = vpop.permute.xlu1 %1007 }
  0xaf   : > { %v908_v4 = vsel %vm906_vm9, %v903_v60, %v905_v0  ;;  %v919_v8 = vsel %vm179_vm1, %v905_v0, 0 }
  0xb0   : > { %1195 = vmatmul.mubr.msk.bf16.vlgmr.msra.gmra.mxu0 %vm175_vm3, %v1193_v53 }
  0xb1   : > { %722 = vmatpush1.bf16.msra.mxu0 %v699_v57  ;;  %739 = vmatprep.mubr.bf16.mxu0 %v1321_v6 }
  0xb2   : > { %1202 = vmatprep.subr.msk.bf16.mxu0 %vm179_vm1, %v801_v59  ;;  %v1010_v9 = vpop.permute.xlu0 %1009  ;;  %v1012_v10 = vpop.permute.xlu1 %1011 }
  0xb3   : > { %1266 = vmatmul.mubr.msk.bf16.vlgmr.msra.gmra.mxu1 %vm175_vm3, %v1197_v61  ;;  %v1015_v12 = vsel %vm1013_vm10, %v1010_v9, %v1012_v10  ;;  %v1014_v14 = vsel %vm1013_vm10, %v1008_v2, %v1010_v9  ;;  %v1026_v15 = vsel %vm179_vm1, %v1012_v10, 0 }
  0xb4   : > { %1270 = vmatpush3.bf16.msra.mxu1 %v812_v63  ;;  %1271 = vmatprep.mubr.msk.bf16.mxu1 %vm1320_vm0, %v1319_v3  ;;  %v1020_v16 = vsel %vm179_vm1, %v1014_v14, 0 }
  0xb5   : > { %1275 = vmatprep.subr.bf16.mxu1 %v1319_v3 }
  0xb8   : > { %1199 = vmatmul.mubr.msk.bf16.vlgmr.msra.gmra.mxu0 %vm175_vm3, %v1197_v61 }
  0xb9   : > { %829 = vmatpush1.bf16.msra.mxu0 %v806_v1  ;;  %846 = vmatprep.mubr.bf16.mxu0 %v1321_v6 }
  0xba   : > { %1206 = vmatprep.subr.msk.bf16.mxu0 %vm179_vm1, %v908_v4 }
  0xbb   : > { %1272 = vmatmul.mubr.msk.bf16.vlgmr.msra.gmra.mxu1 %vm175_vm3, %v1201_v5 }
  0xbc   : > { %1276 = vmatpush3.bf16.msra.mxu1 %v919_v8  ;;  %1277 = vmatprep.mubr.msk.bf16.mxu1 %vm1320_vm0, %v1319_v3 }
  0xbd   : > { %1281 = vmatprep.subr.bf16.mxu1 %v1319_v3 }
  0xc0   : > { %1203 = vmatmul.mubr.msk.bf16.vlgmr.msra.gmra.mxu0 %vm175_vm3, %v1201_v5 }
  0xc1   : > { %936 = vmatpush1.bf16.msra.mxu0 %v913_v11  ;;  %953 = vmatprep.mubr.bf16.mxu0 %v1321_v6 }
  0xc2   : > { %1210 = vmatprep.subr.msk.bf16.mxu0 %vm179_vm1, %v1015_v12 }
  0xc3   : > { %1278 = vmatmul.mubr.msk.bf16.vlgmr.msra.gmra.mxu1 %vm175_vm3, %v1205_v13 }
  0xc4   : > { %1282 = vmatpush3.bf16.msra.mxu1 %v1026_v15  ;;  %1283 = vmatprep.mubr.msk.bf16.mxu1 %vm1320_vm0, %v1319_v3 }
  0xc8   : > { %1207 = vmatmul.mubr.msk.bf16.vlgmr.msra.gmra.mxu0 %vm175_vm3, %v1205_v13 }
  0xc9   : > { %1043 = vmatpush1.bf16.msra.mxu0 %v1020_v16  ;;  %1060 = vmatprep.mubr.bf16.mxu0 %v1321_v6 }
  0xcb   : > { %1284 = vmatmul.mubr.msk.bf16.vlgmr.msra.gmra.mxu1 %vm175_vm3, %v1209_v17 }
  0xd0   : > { %1211 = vmatmul.mubr.msk.bf16.vlgmr.msra.gmra.mxu0 %vm175_vm3, %v1209_v17 }
 0x14b   : > { %v264_v18 = vpop.f32.mrf.mxu1 }
 0x14d   : > { %v1237_v19 = vpop.f32.mrf.mxu1 }
 0x14f   : > { %v267_v21 = vpop.f32.mrf.mxu1 }
 0x150   : > { %v223_v20 = vpop.f32.mrf.mxu0 }
 0x151   : > { %v1238_v23 = vpop.f32.mrf.mxu1 }
 0x152   : > { %v225_v22 = vpop.f32.mrf.mxu0 }
 0x153   : > { %v357_v24 = vpop.f32.mrf.mxu1 }
 0x154   : > { %v227_v3 = vpop.f32.mrf.mxu0  ;;  %v358_v2 = vadd.f32 %v357_v24, %v264_v18 }
 0x155   : > { %v1243_v26 = vpop.f32.mrf.mxu1 }
 0x156   : > { %v228_v25 = vpop.f32.mrf.mxu0 }
 0x157   : > { %v360_v6 = vpop.f32.mrf.mxu1 }
 0x158   : > { %v316_v27 = vpop.f32.mrf.mxu0 }
 0x159   : > { %v1244_v29 = vpop.f32.mrf.mxu1  ;;  %v317_v9 = vadd.f32 %v316_v27, %v223_v20 }
 0x15a   : > { %v318_v28 = vpop.f32.mrf.mxu0 }
 0x15b   : > { %v461_v31 = vpop.f32.mrf.mxu1  ;;  %v319_v13 = vadd.f32 %v318_v28, %v225_v22 }
 0x15c   : > { %v320_v30 = vpop.f32.mrf.mxu0  ;;  %v469_v7 = vadd.f32 %v461_v31, %v358_v2 }
 0x15d   : > { %v1249_v33 = vpop.f32.mrf.mxu1 }
 0x15e   : > { %v321_v32 = vpop.f32.mrf.mxu0 }
 0x15f   : > { %v464_v35 = vpop.f32.mrf.mxu1 }
 0x160   : > { %v420_v34 = vpop.f32.mrf.mxu0 }
 0x161   : > { %v1250_v37 = vpop.f32.mrf.mxu1  ;;  %v467_v14 = vadd.f32 %v420_v34, %v317_v9 }
 0x162   : > { %v422_v36 = vpop.f32.mrf.mxu0 }
 0x163   : > { %v568_v39 = vpop.f32.mrf.mxu1  ;;  %v468_v19 = vadd.f32 %v422_v36, %v319_v13 }
 0x164   : > { %v424_v38 = vpop.f32.mrf.mxu0  ;;  %v576_v11 = vadd.f32 %v568_v39, %v469_v7 }
 0x165   : > { %v1255_v41 = vpop.f32.mrf.mxu1 }
 0x166   : > { %v425_v40 = vpop.f32.mrf.mxu0 }
 0x167   : > { %v571_v43 = vpop.f32.mrf.mxu1 }
 0x168   : > { %v527_v42 = vpop.f32.mrf.mxu0 }
 0x169   : > { %v1256_v45 = vpop.f32.mrf.mxu1  ;;  %v574_v21 = vadd.f32 %v527_v42, %v467_v14 }
 0x16a   : > { %v529_v44 = vpop.f32.mrf.mxu0 }
 0x16b   : > { %v675_v47 = vpop.f32.mrf.mxu1  ;;  %v575_v18 = vadd.f32 %v529_v44, %v468_v19 }
 0x16c   : > { %v531_v46 = vpop.f32.mrf.mxu0  ;;  %v683_v16 = vadd.f32 %v675_v47, %v576_v11 }
 0x16d   : > { %v1261_v49 = vpop.f32.mrf.mxu1 }
 0x16e   : > { %v532_v48 = vpop.f32.mrf.mxu0 }
 0x16f   : > { %v678_v51 = vpop.f32.mrf.mxu1 }
 0x170   : > { %v634_v50 = vpop.f32.mrf.mxu0 }
 0x171   : > { %v1262_v53 = vpop.f32.mrf.mxu1  ;;  %v681_v24 = vadd.f32 %v634_v50, %v574_v21 }
 0x172   : > { %v636_v52 = vpop.f32.mrf.mxu0 }
 0x173   : > { %v782_v55 = vpop.f32.mrf.mxu1  ;;  %v682_v27 = vadd.f32 %v636_v52, %v575_v18 }
 0x174   : > { %v638_v54 = vpop.f32.mrf.mxu0  ;;  %v790_v3 = vadd.f32 %v782_v55, %v683_v16 }
 0x175   : > { %v1267_v57 = vpop.f32.mrf.mxu1 }
 0x176   : > { %v639_v56 = vpop.f32.mrf.mxu0 }
 0x177   : > { %v785_v59 = vpop.f32.mrf.mxu1 }
 0x178   : > { %v741_v58 = vpop.f32.mrf.mxu0 }
 0x179   : > { %v1268_v61 = vpop.f32.mrf.mxu1  ;;  %v788_v29 = vadd.f32 %v741_v58, %v681_v24 }
 0x17a   : > { %v743_v60 = vpop.f32.mrf.mxu0 }
 0x17b   : > { %v889_v63 = vpop.f32.mrf.mxu1  ;;  %v789_v28 = vadd.f32 %v743_v60, %v682_v27 }
 0x17c   : > { %v745_v62 = vpop.f32.mrf.mxu0  ;;  %v897_v6 = vadd.f32 %v889_v63, %v790_v3 }
 0x17d   : > { %v1273_v1 = vpop.f32.mrf.mxu1 }
 0x17e   : > { %v746_v0 = vpop.f32.mrf.mxu0 }
 0x17f   : > { %v892_v5 = vpop.f32.mrf.mxu1 }
 0x180   : > { %v848_v4 = vpop.f32.mrf.mxu0 }
 0x181   : > { %v1274_v10 = vpop.f32.mrf.mxu1  ;;  %v895_v32 = vadd.f32 %v848_v4, %v788_v29 }
 0x182   : > { %v850_v8 = vpop.f32.mrf.mxu0 }
 0x183   : > { %v996_v15 = vpop.f32.mrf.mxu1  ;;  %v896_v36 = vadd.f32 %v850_v8, %v789_v28 }
 0x184   : > { %v852_v12 = vpop.f32.mrf.mxu0  ;;  %v1004_v31 = vadd.f32 %v996_v15, %v897_v6 }
 0x185   : > { %v1279_v23 = vpop.f32.mrf.mxu1 }
 0x186   : > { %v853_v17 = vpop.f32.mrf.mxu0 }
 0x187   : > { %v999_v26 = vpop.f32.mrf.mxu1 }
 0x188   : > { %v955_v25 = vpop.f32.mrf.mxu0 }
 0x189   : > { %v1280_v30 = vpop.f32.mrf.mxu1  ;;  %v1002_v37 = vadd.f32 %v955_v25, %v895_v32 }
 0x18a   : > { %v957_v20 = vpop.f32.mrf.mxu0 }
 0x18b   : > { %v1103_v33 = vpop.f32.mrf.mxu1  ;;  %v1003_v40 = vadd.f32 %v957_v20, %v896_v36 }
 0x18c   : > { %v959_v22 = vpop.f32.mrf.mxu0  ;;  %v1111_v34 = vadd.f32 %v1103_v33, %v1004_v31 }
 0x18d   : > { %v1285_v38 = vpop.f32.mrf.mxu1 }
 0x18e   : > { %v960_v35 = vpop.f32.mrf.mxu0  ;;  %1115 = vst.msk [vmem:[%s143_s18 + $0x10] sm:$0xff] %vm1114_vm11, %v1111_v34 }
 0x18f   : > { %v1106_v42 = vpop.f32.mrf.mxu1 }
 0x190   : > { %v1062_v39 = vpop.f32.mrf.mxu0 }
 0x191   : > { %v1109_v41 = vadd.f32 %v1062_v39, %v1002_v37  ;;  %v1286_v45 = vpop.f32.mrf.mxu1 }
 0x192   : > { %v1064_v43 = vpop.f32.mrf.mxu0 }
 0x193   : > { %1112 = vst [vmem:[%s143_s18] sm:$0xff] %v1109_v41  ;;  %v1110_v44 = vadd.f32 %v1064_v43, %v1003_v40 }
 0x194   : > { %v1066_v46 = vpop.f32.mrf.mxu0 }
 0x195   : > { %1113 = vst [vmem:[%s143_s18 + $0x8] sm:$0xff] %v1110_v44 }
 0x196   : > { %v1067_v47 = vpop.f32.mrf.mxu0 }
 0x197 PF: > { %s12_s9 = sadd.s32 1, %s1316_s9  }
 0x198   : > { %p9_p4 = scmp.ge.s32.totalorder %s12_s9, 4  }
 0x19a   :  { %11 = sbr.rel (!%p9_p4) target bundleno = 1 (0x1), region = 66 }

</bundles_post_ra>
